<compile_context>
chip_gen: v6e
topology: v6e:2x2x1
jax: 0.10.0
libtpu: 0.0.40
codegen_flags: <defaults>
</compile_context>

<pallas_src>
import math

import jax
import jax.numpy as jnp
from jax.experimental import pallas as pl
from jax.experimental.pallas import tpu as pltpu

_SQRT_2_OVER_PI = 0.7978845608028654


def _mlp_kernel(x_ref, w1_ref, b1_ref, w2_ref, b2_ref, o_ref):
    # x_ref : (TM, EG)   folded activations (EG = G * n_embd, multiple of 128)
    # w1_ref: (HG, EG)   c_fc weight, native (out, in) layout (block-diag if G>1)
    # b1_ref: (1, HG)
    # w2_ref: (EG, HG)   c_proj weight, native (out, in) layout (block-diag if G>1)
    # b2_ref: (1, EG)
    # o_ref : (TM, EG)
    trans_b = (((1,), (1,)), ((), ()))  # contract lhs dim 1 with rhs dim 1 (y = x @ W^T)

    x = x_ref[...]

    # c_fc: x @ W1^T + b1  — MXU consumes the (out, in) RHS natively, f32 accumulate.
    h = jax.lax.dot_general(x, w1_ref[...], dimension_numbers=trans_b,
                            preferred_element_type=jnp.float32)
    h = h + b1_ref[...].astype(jnp.float32)

    # GELU(approximate='tanh') in f32:
    #   0.5 * h * (1 + tanh( sqrt(2/pi) * (h + 0.044715 * h^3) ))
    c = jnp.float32(_SQRT_2_OVER_PI)
    h = 0.5 * h * (1.0 + jnp.tanh(c * (h + 0.044715 * (h * h * h))))

    # c_proj: gelu(h) @ W2^T + b2  (cast once to the weight dtype for the MXU).
    y = jax.lax.dot_general(h.astype(w2_ref.dtype), w2_ref[...],
                            dimension_numbers=trans_b,
                            preferred_element_type=jnp.float32)
    y = y + b2_ref[...].astype(jnp.float32)

    o_ref[...] = y.astype(o_ref.dtype)


def mlp_forward(x, w_fc, b_fc, w_proj, b_proj, *, block_tokens=512):
    """Fused MLP forward.

    x: (B, T, E); w_fc: (H, E); b_fc: (H,); w_proj: (E, H); b_proj: (E,)
    with H = 4*E, weights in nn.Linear (out, in) layout: y = x @ W^T + b.
    """
    B, T, E = x.shape
    H = w_fc.shape[0]
    N = B * T
    dt = x.dtype

    # Fold G consecutive tokens into the lane dim so every operand's last dim
    # is a multiple of 128 (lane-dense, unmasked stores).
    G = 128 // math.gcd(E, 128)
    EG, HG = G * E, G * H

    if G == 1:
        w1, w2 = w_fc, w_proj                      # native (out, in), untouched
        b1 = b_fc.reshape(1, H)
        b2 = b_proj.reshape(1, E)
    else:
        eye = jnp.eye(G, dtype=w_fc.dtype)
        w1 = jnp.kron(eye, w_fc)                   # (HG, EG) block-diagonal
        w2 = jnp.kron(eye, w_proj)                 # (EG, HG) block-diagonal
        b1 = jnp.tile(b_fc, G).reshape(1, HG)
        b2 = jnp.tile(b_proj, G).reshape(1, EG)

    # Row tiling in folded rows: ~block_tokens tokens per grid step,
    # multiple of 8 sublanes.
    n_f = -(-N // G)
    tm = max(8, min(-(-block_tokens // G), n_f))
    tm = -(-tm // 8) * 8
    n_f_pad = -(-n_f // tm) * tm
    n_tok_pad = n_f_pad * G

    x2 = x.reshape(N, E)
    if n_tok_pad != N:
        x2 = jnp.pad(x2, ((0, n_tok_pad - N), (0, 0)))
    x_f = x2.reshape(n_f_pad, EG)                  # free, contiguous reshape

    grid = (n_f_pad // tm,)

    itemsize = x.dtype.itemsize
    cost = pl.CostEstimate(
        flops=4 * N * E * H,                       # two matmuls
        transcendentals=N * H,                     # tanh in GELU
        bytes_accessed=int(
            (x_f.size + w1.size + w2.size + b1.size + b2.size + n_f_pad * EG)
            * itemsize),
    )

    out = pl.pallas_call(
        _mlp_kernel,
        out_shape=jax.ShapeDtypeStruct((n_f_pad, EG), dt),
        grid=grid,
        in_specs=[
            pl.BlockSpec((tm, EG), lambda i: (i, 0)),   # x: streamed per step
            pl.BlockSpec((HG, EG), lambda i: (0, 0)),   # weights/biases: resident
            pl.BlockSpec((1, HG), lambda i: (0, 0)),
            pl.BlockSpec((EG, HG), lambda i: (0, 0)),
            pl.BlockSpec((1, EG), lambda i: (0, 0)),
        ],
        out_specs=pl.BlockSpec((tm, EG), lambda i: (i, 0)),
        compiler_params=pltpu.CompilerParams(
            dimension_semantics=("parallel",),          # use both TCs on v7x
            vmem_limit_bytes=32 * 1024 * 1024),
        cost_estimate=cost,
    )(x_f, w1, b1, w2, b2)

    return out.reshape(n_tok_pad, E)[:N].reshape(B, T, E)


def _reference(x, w_fc, b_fc, w_proj, b_proj):
    h = jnp.einsum('bte,he->bth', x, w_fc) + b_fc
    h = 0.5 * h * (1.0 + jnp.tanh(_SQRT_2_OVER_PI * (h + 0.044715 * h ** 3)))
    return jnp.einsum('bth,eh->bte', h, w_proj) + b_proj


if __name__ == "__main__":
    # Small config consistent with the module: n_embd=32, hidden=4*32=128.
    B, T, n_embd = 2, 8, 32
    hidden = 4 * n_embd

    key = jax.random.PRNGKey(0)
    kx, k1, k2, k3, k4 = jax.random.split(key, 5)

    x = jax.random.normal(kx, (B, T, n_embd), dtype=jnp.float32)
    # Deterministic parameter init (shapes follow nn.Linear: (out, in)).
    w_fc = jax.random.normal(k1, (hidden, n_embd), dtype=jnp.float32) * 0.02
    b_fc = jax.random.normal(k2, (hidden,), dtype=jnp.float32) * 0.02
    w_proj = jax.random.normal(k3, (n_embd, hidden), dtype=jnp.float32) * 0.02
    b_proj = jax.random.normal(k4, (n_embd,), dtype=jnp.float32) * 0.02

    y = mlp_forward(x, w_fc, b_fc, w_proj, b_proj)
    y = jax.block_until_ready(y)

    y_ref = _reference(x, w_fc, b_fc, w_proj, b_proj)
    assert y.shape == (B, T, n_embd)
    assert jnp.allclose(y, y_ref, atol=1e-4, rtol=1e-4), "mismatch vs reference"

    print("KERNEL_OK")
</pallas_src>

<mosaic_0001>
module attributes {stable_mosaic.version = 11 : i64} {
  func.func @_mlp_kernel(%arg0: i32, %arg1: memref<8x128xf32, #tpu.memory_space<vmem>>, %arg2: memref<512x128xf32, #tpu.memory_space<vmem>>, %arg3: memref<1x512xf32, #tpu.memory_space<vmem>>, %arg4: memref<128x512xf32, #tpu.memory_space<vmem>>, %arg5: memref<1x128xf32, #tpu.memory_space<vmem>>, %arg6: memref<8x128xf32, #tpu.memory_space<vmem>>) attributes {dimension_semantics = [#tpu.dimension_semantics<parallel>], iteration_bounds = array<i64: 1>, scalar_prefetch = 0 : i64, scratch_operands = 0 : i64, tpu.core_type = #tpu.core_type<tc>, window_params = [{transform_indices = @transform_0, window_bounds = array<i64: 8, 128>}, {pipeline_mode = #tpu.pipeline_mode<synchronous>, transform_indices = @transform_1, window_bounds = array<i64: 512, 128>}, {pipeline_mode = #tpu.pipeline_mode<synchronous>, transform_indices = @transform_2, window_bounds = array<i64: 1, 512>}, {pipeline_mode = #tpu.pipeline_mode<synchronous>, transform_indices = @transform_3, window_bounds = array<i64: 128, 512>}, {pipeline_mode = #tpu.pipeline_mode<synchronous>, transform_indices = @transform_4, window_bounds = array<i64: 1, 128>}, {transform_indices = @transform_5, window_bounds = array<i64: 8, 128>}]} {
    %c0 = arith.constant 0 : index
    %c0_0 = arith.constant 0 : index
    %0 = vector.load %arg1[%c0, %c0_0] : memref<8x128xf32, #tpu.memory_space<vmem>>, vector<8x128xf32>
    %c0_1 = arith.constant 0 : index
    %c0_2 = arith.constant 0 : index
    %1 = vector.load %arg2[%c0_1, %c0_2] : memref<512x128xf32, #tpu.memory_space<vmem>>, vector<512x128xf32>
    %cst = arith.constant dense<0.000000e+00> : vector<8x512xf32>
    %2 = tpu.matmul %0, %1, %cst {dimension_numbers = #tpu.dot_dimension_numbers<[1], [1], [0], [0], [0, 0, 1, 0], [], []>} : vector<8x128xf32>, vector<512x128xf32>, vector<8x512xf32> -> vector<8x512xf32>
    %c0_3 = arith.constant 0 : index
    %c0_4 = arith.constant 0 : index
    %3 = vector.load %arg3[%c0_3, %c0_4] : memref<1x512xf32, #tpu.memory_space<vmem>>, vector<1x512xf32>
    %4 = vector.broadcast %3 : vector<1x512xf32> to vector<8x512xf32>
    %5 = arith.addf %2, %4 : vector<8x512xf32>
    %cst_5 = arith.constant 5.000000e-01 : f32
    %6 = vector.broadcast %cst_5 : f32 to vector<8x512xf32>
    %7 = arith.mulf %6, %5 : vector<8x512xf32>
    %8 = arith.mulf %5, %5 : vector<8x512xf32>
    %9 = arith.mulf %8, %5 : vector<8x512xf32>
    %cst_6 = arith.constant 4.471500e-02 : f32
    %10 = vector.broadcast %cst_6 : f32 to vector<8x512xf32>
    %11 = arith.mulf %10, %9 : vector<8x512xf32>
    %12 = arith.addf %5, %11 : vector<8x512xf32>
    %cst_7 = arith.constant 0.797884583 : f32
    %13 = vector.broadcast %cst_7 : f32 to vector<8x512xf32>
    %14 = arith.mulf %13, %12 : vector<8x512xf32>
    %15 = math.tanh %14 : vector<8x512xf32>
    %cst_8 = arith.constant 1.000000e+00 : f32
    %16 = vector.broadcast %cst_8 : f32 to vector<8x512xf32>
    %17 = arith.addf %16, %15 : vector<8x512xf32>
    %18 = arith.mulf %7, %17 : vector<8x512xf32>
    %c0_9 = arith.constant 0 : index
    %c0_10 = arith.constant 0 : index
    %19 = vector.load %arg4[%c0_9, %c0_10] : memref<128x512xf32, #tpu.memory_space<vmem>>, vector<128x512xf32>
    %cst_11 = arith.constant dense<0.000000e+00> : vector<8x128xf32>
    %20 = tpu.matmul %18, %19, %cst_11 {dimension_numbers = #tpu.dot_dimension_numbers<[1], [1], [0], [0], [0, 0, 1, 0], [], []>} : vector<8x512xf32>, vector<128x512xf32>, vector<8x128xf32> -> vector<8x128xf32>
    %c0_12 = arith.constant 0 : index
    %c0_13 = arith.constant 0 : index
    %21 = vector.load %arg5[%c0_12, %c0_13] : memref<1x128xf32, #tpu.memory_space<vmem>>, vector<1x128xf32>
    %22 = vector.broadcast %21 : vector<1x128xf32> to vector<8x128xf32>
    %23 = arith.addf %20, %22 : vector<8x128xf32>
    %c0_14 = arith.constant 0 : index
    %c0_15 = arith.constant 0 : index
    %24 = vector.load %arg6[%c0_14, %c0_15] : memref<8x128xf32, #tpu.memory_space<vmem>>, vector<8x128xf32>
    tpu.vector_store %arg6[%c0_14, %c0_15], %23 {strides = array<i32>} : memref<8x128xf32, #tpu.memory_space<vmem>>, vector<8x128xf32>,
    return
  }
  func.func @transform_0(%arg0: i32) -> (i32, i32) {
    %c0_i32 = arith.constant 0 : i32
    %c0_i32_0 = arith.constant 0 : i32
    return %arg0, %c0_i32 : i32, i32
  }
  func.func @transform_1(%arg0: i32) -> (i32, i32) {
    %c0_i32 = arith.constant 0 : i32
    %c0_i32_0 = arith.constant 0 : i32
    %c0_i32_1 = arith.constant 0 : i32
    return %c0_i32, %c0_i32_0 : i32, i32
  }
  func.func @transform_2(%arg0: i32) -> (i32, i32) {
    %c0_i32 = arith.constant 0 : i32
    %c0_i32_0 = arith.constant 0 : i32
    %c0_i32_1 = arith.constant 0 : i32
    return %c0_i32, %c0_i32_0 : i32, i32
  }
  func.func @transform_3(%arg0: i32) -> (i32, i32) {
    %c0_i32 = arith.constant 0 : i32
    %c0_i32_0 = arith.constant 0 : i32
    %c0_i32_1 = arith.constant 0 : i32
    return %c0_i32, %c0_i32_0 : i32, i32
  }
  func.func @transform_4(%arg0: i32) -> (i32, i32) {
    %c0_i32 = arith.constant 0 : i32
    %c0_i32_0 = arith.constant 0 : i32
    %c0_i32_1 = arith.constant 0 : i32
    return %c0_i32, %c0_i32_0 : i32, i32
  }
  func.func @transform_5(%arg0: i32) -> (i32, i32) {
    %c0_i32 = arith.constant 0 : i32
    %c0_i32_0 = arith.constant 0 : i32
    return %arg0, %c0_i32 : i32, i32
  }
}

</mosaic_0001>

<bundles_post_ra>
// kernel: tpu_custom_call.1
= control target key start
LH: loop header
LB: loop body
LE: loop exit
PB: predicated region body
PF: predicated region fallthrough
CT: control target
= control target key end

     0   :  { %10 = vsyncpa [#allocation3], 0  ;;  %s823_s0 = inlined_call_operand.hbm [shape: f32[8,128], index: 0, kind: input, shape index: {}]   ;;  %s824_s1 = inlined_call_operand.hbm [shape: f32[512,128], index: 1, kind: input, shape index: {}]   ;;  %s825_s2 = inlined_call_operand.hbm [shape: f32[1,512], index: 2, kind: input, shape index: {}]   ;;  %s826_s3 = inlined_call_operand.hbm [shape: f32[128,512], index: 3, kind: input, shape index: {}]   ;;  %s827_s4 = inlined_call_operand.vmem [shape: f32[1,128], index: 4, kind: input, shape index: {}]   ;;  %s828_s5 = inlined_call_operand.hbm [shape: f32[8,128], index: 5, kind: output, shape index: {}]  }
   0x1   :  { %11 = vsyncpa [#allocation6], 0 }
   0x2   :  { %12 = vsyncpa [#allocation9], 0 }
   0x3   :  { %13 = vsyncpa [#allocation4], 0  ;;  %s760_s18 = smov [#allocation5]  }
   0x4   :  { %s29_s19 = sshll.u32 %s760_s18, 4  ;;  %s30_s19 = int_to_ptr.vmem [resolvable:$true] %s29_s19 }
   0x5   :  { %s660_s20 = scalar_lea.vmem %s30_s19, 8192  ;;  %p665_p1 = scmp.lt.s32.totalorder %s30_s19, %s30_s19 }
   0x6   :  { %p661_p0 = scmp.ne.s32.totalorder %s30_s19, %s660_s20  ;;  %p666_p2 = scmp.lt.s32.totalorder %s660_s20, %s660_s20 }
   0x8   :  { %p667_p3 = por %p666_p2, %p665_p1 }
   0xa   :  { %p668_p4 = pnand %p667_p3, %p661_p0 }
   0xc   :  { %671 = shalt.err (!%p668_p4)
}
   0xd   :  { %s761_s21 = smov 128   ;;  %s762_s22 = smov 8  }
   0xe   :  { %35 = dma.hbm_to_vmem [thread:$0]  %s824_s1, 8192, %s30_s19, [#allocation6], %s761_s21, %s761_s21, %s762_s22  }
   0xf   :  { %s763_s25 = smov [#allocation2]   ;;  %s764_s27 = smov [#allocation7]  }
  0x10   :  { %s20_s26 = sshll.u32 %s763_s25, 4  ;;  %s42_s28 = sshll.u32 %s764_s27, 4  ;;  %s21_s26 = int_to_ptr.vmem [resolvable:$true] %s20_s26  ;;  %s43_s28 = int_to_ptr.vmem [resolvable:$true] %s42_s28 }
  0x11   :  { %s680_s29 = scalar_lea.vmem %s21_s26, 128  ;;  %p685_p6 = scmp.lt.s32.totalorder %s21_s26, %s21_s26 }
  0x12   :  { %p681_p5 = scmp.ne.s32.totalorder %s21_s26, %s680_s29  ;;  %p686_p7 = scmp.lt.s32.totalorder %s680_s29, %s680_s29 }
  0x14   :  { %p687_p8 = por %p686_p7, %p685_p6 }
  0x16   :  { %p688_p9 = pnand %p687_p8, %p681_p5 }
  0x18   :  { %691 = shalt.err (!%p688_p9)
}
  0x19   :  { %23 = dma.hbm_to_vmem [thread:$0]  %s823_s0, 128, %s21_s26, [#allocation3]  }
  0x1a   :  { %s700_s7 = scalar_lea.vmem %s43_s28, 64  ;;  %p705_p11 = scmp.lt.s32.totalorder %s43_s28, %s43_s28 }
  0x1b   :  { %p701_p10 = scmp.ne.s32.totalorder %s43_s28, %s700_s7  ;;  %p706_p12 = scmp.lt.s32.totalorder %s700_s7, %s700_s7 }
  0x1d   :  { %p707_p13 = por %p706_p12, %p705_p11 }
  0x1f   :  { %p708_p0 = pnand %p707_p13, %p701_p10 }
  0x21   :  { %711 = shalt.err (!%p708_p0)
}
  0x22   :  { %45 = dma.hbm_to_vmem [thread:$0]  %s825_s2, 64, %s43_s28, [#allocation6]  }
  0x23   :  { %s765_s9 = smov [#allocation8]  }
  0x24   :  { %s51_s10 = sshll.u32 %s765_s9, 4  ;;  %s52_s10 = int_to_ptr.vmem [resolvable:$true] %s51_s10 }
  0x25   :  { %s720_s11 = scalar_lea.vmem %s52_s10, 8192  ;;  %p725_p2 = scmp.lt.s32.totalorder %s52_s10, %s52_s10 }
  0x26   :  { %p721_p1 = scmp.ne.s32.totalorder %s52_s10, %s720_s11  ;;  %p726_p3 = scmp.lt.s32.totalorder %s720_s11, %s720_s11 }
  0x28   :  { %p727_p4 = por %p726_p3, %p725_p2 }
  0x2a   :  { %p728_p5 = pnand %p727_p4, %p721_p1 }
  0x2c   :  { %731 = shalt.err (!%p728_p5)
}
  0x2d   :  { %s766_s0 = smov 512   ;;  %s767_s12 = smov 32  }
  0x2e   :  { %57 = dma.hbm_to_vmem [thread:$0]  %s826_s3, 8192, %s52_s10, [#allocation9], %s766_s0, %s766_s0, %s767_s12  }
  0x2f   :  { %752 = dma.done.wait [#allocation3], 128  }
  0x30   :  { %753 = vsyncadd [#allocation3], 4294967168 }
  0x31   :  { %754 = dma.done.wait [#allocation6], 8256  }
  0x32   :  { %755 = vsyncadd [#allocation6], 4294959040 }
  0x33   :  { %756 = dma.done.wait [#allocation9], 8192  }
  0x34   :  { %757 = vsyncadd [#allocation9], 4294959104  ;;  %v104_v0 = vld [vmem:[#allocation5 + $0xf8] sm:$0xff]  ;;  %v103_v4 = vld [vmem:[#allocation5 + $0xf0] sm:$0xff]  ;;  %s768_s15 = smov [#allocation10]  }
  0x35   :  { %v136_v1 = vld [vmem:[#allocation5 + $0x1f8] sm:$0xff]  ;;  %567 = vmatprep.subr.mxu0 %v104_v0  ;;  %v135_v5 = vld [vmem:[#allocation5 + $0x1f0] sm:$0xff]  ;;  %v102_v8 = vld [vmem:[#allocation5 + $0xe8] sm:$0xff]  ;;  %s555_s16 = sshll.u32 %s768_s15, 4  ;;  %s556_s16 = int_to_ptr.vmem [resolvable:$true] %s555_s16 }
  0x36   :  { %v88_v2 = vld [vmem:[#allocation5 + $0x78] sm:$0xff]  ;;  %601 = vmatprep.subr.mxu1 %v136_v1  ;;  %v87_v6 = vld [vmem:[#allocation5 + $0x70] sm:$0xff]  ;;  %v134_v9 = vld [vmem:[#allocation5 + $0x1e8] sm:$0xff]  ;;  %s732_s17 = scalar_lea.vmem %s556_s16, 128  ;;  %p737_p7 = scmp.lt.s32.totalorder %s556_s16, %s556_s16 }
  0x37   :  { %v120_v3 = vld [vmem:[#allocation5 + $0x178] sm:$0xff]  ;;  %568 = vmatpush3.xpose.msra.mxu0 %v88_v2  ;;  %v119_v7 = vld [vmem:[#allocation5 + $0x170] sm:$0xff]  ;;  %v86_v10 = vld [vmem:[#allocation5 + $0x68] sm:$0xff]  ;;  %p733_p6 = scmp.ne.s32.totalorder %s556_s16, %s732_s17  ;;  %p738_p8 = scmp.lt.s32.totalorder %s732_s17, %s732_s17 }
  0x38   :  { %602 = vmatpush3.xpose.msra.mxu1 %v120_v3  ;;  %569 = vmatprep.subr.mxu0 %v103_v4  ;;  %v118_v11 = vld [vmem:[#allocation5 + $0x168] sm:$0xff]  ;;  %v101_v12 = vld [vmem:[#allocation5 + $0xe0] sm:$0xff]  ;;  %v100_v16 = vld [vmem:[#allocation5 + $0xd8] sm:$0xff] }
  0x39   :  { %603 = vmatprep.subr.mxu1 %v135_v5  ;;  %v133_v13 = vld [vmem:[#allocation5 + $0x1e0] sm:$0xff]  ;;  %v132_v17 = vld [vmem:[#allocation5 + $0x1d8] sm:$0xff]  ;;  %v99_v20 = vld [vmem:[#allocation5 + $0xd0] sm:$0xff]  ;;  %p739_p9 = por %p738_p8, %p737_p7 }
  0x3a   :  { %v85_v14 = vld [vmem:[#allocation5 + $0x60] sm:$0xff]  ;;  %v84_v18 = vld [vmem:[#allocation5 + $0x58] sm:$0xff]  ;;  %v131_v21 = vld [vmem:[#allocation5 + $0x1d0] sm:$0xff] }
  0x3b   :  { %570 = vmatpush3.xpose.msra.mxu0 %v87_v6  ;;  %v117_v15 = vld [vmem:[#allocation5 + $0x160] sm:$0xff]  ;;  %v116_v19 = vld [vmem:[#allocation5 + $0x158] sm:$0xff]  ;;  %v83_v22 = vld [vmem:[#allocation5 + $0x50] sm:$0xff]  ;;  %p740_p10 = pnand %p739_p9, %p733_p6 }
  0x3c   :  { %604 = vmatpush3.xpose.msra.mxu1 %v119_v7  ;;  %571 = vmatprep.subr.mxu0 %v102_v8  ;;  %v115_v23 = vld [vmem:[#allocation5 + $0x150] sm:$0xff]  ;;  %v98_v24 = vld [vmem:[#allocation5 + $0xc8] sm:$0xff]  ;;  %v811_v26 = vld [vmem:[#allocation2] sm:$0xff] }
  0x3d   :  { %605 = vmatprep.subr.mxu1 %v134_v9  ;;  %v130_v25 = vld [vmem:[#allocation5 + $0x1c8] sm:$0xff]  ;;  %v97_v29 = vld [vmem:[#allocation5 + $0xc0] sm:$0xff]  ;;  %599 = vmatprep.mubr.f32.mxu0 %v811_v26  ;;  %v96_v33 = vld [vmem:[#allocation5 + $0xb8] sm:$0xff] }
  0x3e   :  { %v82_v27 = vld [vmem:[#allocation5 + $0x48] sm:$0xff]  ;;  %v129_v30 = vld [vmem:[#allocation5 + $0x1c0] sm:$0xff]  ;;  %633 = vmatprep.mubr.f32.mxu1 %v811_v26  ;;  %v128_v34 = vld [vmem:[#allocation5 + $0x1b8] sm:$0xff] }
  0x3f   :  { %572 = vmatpush3.xpose.msra.mxu0 %v86_v10  ;;  %v114_v28 = vld [vmem:[#allocation5 + $0x148] sm:$0xff]  ;;  %v81_v31 = vld [vmem:[#allocation5 + $0x40] sm:$0xff]  ;;  %v80_v35 = vld [vmem:[#allocation5 + $0x38] sm:$0xff] }
  0x40   :  { %606 = vmatpush3.xpose.msra.mxu1 %v118_v11  ;;  %573 = vmatprep.subr.mxu0 %v101_v12  ;;  %v113_v32 = vld [vmem:[#allocation5 + $0x140] sm:$0xff]  ;;  %v112_v36 = vld [vmem:[#allocation5 + $0x138] sm:$0xff]  ;;  %v95_v37 = vld [vmem:[#allocation5 + $0xb0] sm:$0xff] }
  0x41   :  { %607 = vmatprep.subr.mxu1 %v133_v13  ;;  %v127_v38 = vld [vmem:[#allocation5 + $0x1b0] sm:$0xff]  ;;  %v94_v41 = vld [vmem:[#allocation5 + $0xa8] sm:$0xff]  ;;  %v93_v45 = vld [vmem:[#allocation5 + $0xa0] sm:$0xff] }
  0x42   :  { %v79_v39 = vld [vmem:[#allocation5 + $0x30] sm:$0xff]  ;;  %v126_v42 = vld [vmem:[#allocation5 + $0x1a8] sm:$0xff]  ;;  %v125_v46 = vld [vmem:[#allocation5 + $0x1a0] sm:$0xff] }
  0x43   :  { %574 = vmatpush3.xpose.msra.mxu0 %v85_v14  ;;  %v111_v40 = vld [vmem:[#allocation5 + $0x130] sm:$0xff]  ;;  %v78_v43 = vld [vmem:[#allocation5 + $0x28] sm:$0xff]  ;;  %v77_v47 = vld [vmem:[#allocation5 + $0x20] sm:$0xff] }
  0x44   :  { %608 = vmatpush3.xpose.msra.mxu1 %v117_v15  ;;  %575 = vmatprep.subr.mxu0 %v100_v16  ;;  %v110_v44 = vld [vmem:[#allocation5 + $0x128] sm:$0xff]  ;;  %v109_v48 = vld [vmem:[#allocation5 + $0x120] sm:$0xff]  ;;  %v92_v49 = vld [vmem:[#allocation5 + $0x98] sm:$0xff] }
  0x45   :  { %609 = vmatprep.subr.mxu1 %v132_v17  ;;  %v124_v50 = vld [vmem:[#allocation5 + $0x198] sm:$0xff]  ;;  %v91_v53 = vld [vmem:[#allocation5 + $0x90] sm:$0xff]  ;;  %v90_v57 = vld [vmem:[#allocation5 + $0x88] sm:$0xff] }
  0x46   :  { %v76_v51 = vld [vmem:[#allocation5 + $0x18] sm:$0xff]  ;;  %v123_v54 = vld [vmem:[#allocation5 + $0x190] sm:$0xff]  ;;  %v122_v58 = vld [vmem:[#allocation5 + $0x188] sm:$0xff] }
  0x47   :  { %576 = vmatpush3.xpose.msra.mxu0 %v84_v18  ;;  %v108_v52 = vld [vmem:[#allocation5 + $0x118] sm:$0xff]  ;;  %v75_v55 = vld [vmem:[#allocation5 + $0x10] sm:$0xff]  ;;  %v74_v59 = vld [vmem:[#allocation5 + $0x8] sm:$0xff] }
  0x48   :  { %610 = vmatpush3.xpose.msra.mxu1 %v116_v19  ;;  %577 = vmatprep.subr.mxu0 %v99_v20  ;;  %v107_v56 = vld [vmem:[#allocation5 + $0x110] sm:$0xff]  ;;  %v106_v60 = vld [vmem:[#allocation5 + $0x108] sm:$0xff]  ;;  %v89_v61 = vld [vmem:[#allocation5 + $0x80] sm:$0xff] }
  0x49   :  { %611 = vmatprep.subr.mxu1 %v131_v21  ;;  %v121_v62 = vld [vmem:[#allocation5 + $0x180] sm:$0xff]  ;;  %v398_v1 = vld [vmem:[#allocation8 + $0x1e8] sm:$0xff]  ;;  %v399_v4 = vld [vmem:[#allocation8 + $0x1f0] sm:$0xff] }
  0x4a   :  { %v73_v63 = vld [vmem:[#allocation5] sm:$0xff]  ;;  %v394_v5 = vld [vmem:[#allocation8 + $0x1c8] sm:$0xff]  ;;  %v395_v8 = vld [vmem:[#allocation8 + $0x1d0] sm:$0xff] }
  0x4b   :  { %578 = vmatpush3.xpose.msra.mxu0 %v83_v22  ;;  %v105_v0 = vld [vmem:[#allocation5 + $0x100] sm:$0xff]  ;;  %v390_v9 = vld [vmem:[#allocation8 + $0x1a8] sm:$0xff]  ;;  %v391_v12 = vld [vmem:[#allocation8 + $0x1b0] sm:$0xff] }
  0x4c   :  { %612 = vmatpush3.xpose.msra.mxu1 %v115_v23  ;;  %579 = vmatprep.subr.mxu0 %v98_v24  ;;  %v400_v2 = vld [vmem:[#allocation8 + $0x1f8] sm:$0xff]  ;;  %v397_v3 = vld [vmem:[#allocation8 + $0x1e0] sm:$0xff]  ;;  %v386_v13 = vld [vmem:[#allocation8 + $0x188] sm:$0xff] }
  0x4d   :  { %613 = vmatprep.subr.mxu1 %v130_v25  ;;  %v396_v6 = vld [vmem:[#allocation8 + $0x1d8] sm:$0xff]  ;;  %v393_v7 = vld [vmem:[#allocation8 + $0x1c0] sm:$0xff]  ;;  %v387_v16 = vld [vmem:[#allocation8 + $0x190] sm:$0xff] }
  0x4e   :  { %v392_v10 = vld [vmem:[#allocation8 + $0x1b8] sm:$0xff]  ;;  %v389_v11 = vld [vmem:[#allocation8 + $0x1a0] sm:$0xff]  ;;  %v382_v17 = vld [vmem:[#allocation8 + $0x168] sm:$0xff] }
  0x4f   :  { %580 = vmatpush3.xpose.msra.mxu0 %v82_v27  ;;  %v388_v14 = vld [vmem:[#allocation8 + $0x198] sm:$0xff]  ;;  %v385_v15 = vld [vmem:[#allocation8 + $0x180] sm:$0xff]  ;;  %v383_v20 = vld [vmem:[#allocation8 + $0x170] sm:$0xff] }
  0x50   :  { %614 = vmatpush3.xpose.msra.mxu1 %v114_v28  ;;  %581 = vmatprep.subr.mxu0 %v97_v29  ;;  %v384_v18 = vld [vmem:[#allocation8 + $0x178] sm:$0xff]  ;;  %v381_v19 = vld [vmem:[#allocation8 + $0x160] sm:$0xff]  ;;  %v378_v21 = vld [vmem:[#allocation8 + $0x148] sm:$0xff] }
  0x51   :  { %615 = vmatprep.subr.mxu1 %v129_v30  ;;  %v380_v22 = vld [vmem:[#allocation8 + $0x158] sm:$0xff]  ;;  %v377_v23 = vld [vmem:[#allocation8 + $0x140] sm:$0xff]  ;;  %v379_v24 = vld [vmem:[#allocation8 + $0x150] sm:$0xff] }
  0x52   :  { %v374_v25 = vld [vmem:[#allocation8 + $0x128] sm:$0xff]  ;;  %v373_v27 = vld [vmem:[#allocation8 + $0x120] sm:$0xff]  ;;  %v375_v28 = vld [vmem:[#allocation8 + $0x130] sm:$0xff] }
  0x53   :  { %582 = vmatpush3.xpose.msra.mxu0 %v81_v31  ;;  %v370_v29 = vld [vmem:[#allocation8 + $0x108] sm:$0xff]  ;;  %v372_v30 = vld [vmem:[#allocation8 + $0x118] sm:$0xff]  ;;  %v369_v31 = vld [vmem:[#allocation8 + $0x100] sm:$0xff] }
  0x54   :  { %616 = vmatpush3.xpose.msra.mxu1 %v113_v32  ;;  %583 = vmatprep.subr.mxu0 %v96_v33  ;;  %v371_v32 = vld [vmem:[#allocation8 + $0x110] sm:$0xff]  ;;  %v366_v33 = vld [vmem:[#allocation8 + $0xe8] sm:$0xff] }
  0x55   :  { %617 = vmatprep.subr.mxu1 %v128_v34  ;;  %v368_v34 = vld [vmem:[#allocation8 + $0xf8] sm:$0xff] }
  0x57   :  { %584 = vmatpush3.xpose.msra.mxu0 %v80_v35  ;;  %v365_v35 = vld [vmem:[#allocation8 + $0xe0] sm:$0xff] }
  0x58   :  { %618 = vmatpush3.xpose.msra.mxu1 %v112_v36  ;;  %585 = vmatprep.subr.mxu0 %v95_v37  ;;  %v367_v36 = vld [vmem:[#allocation8 + $0xf0] sm:$0xff]  ;;  %v362_v37 = vld [vmem:[#allocation8 + $0xc8] sm:$0xff] }
  0x59   :  { %619 = vmatprep.subr.mxu1 %v127_v38  ;;  %v364_v38 = vld [vmem:[#allocation8 + $0xd8] sm:$0xff] }
  0x5b   :  { %586 = vmatpush3.xpose.msra.mxu0 %v79_v39  ;;  %v361_v39 = vld [vmem:[#allocation8 + $0xc0] sm:$0xff] }
  0x5c   :  { %620 = vmatpush3.xpose.msra.mxu1 %v111_v40  ;;  %587 = vmatprep.subr.mxu0 %v94_v41  ;;  %v363_v40 = vld [vmem:[#allocation8 + $0xd0] sm:$0xff]  ;;  %v358_v41 = vld [vmem:[#allocation8 + $0xa8] sm:$0xff] }
  0x5d   :  { %621 = vmatprep.subr.mxu1 %v126_v42  ;;  %v360_v42 = vld [vmem:[#allocation8 + $0xb8] sm:$0xff] }
  0x5f   :  { %588 = vmatpush3.xpose.msra.mxu0 %v78_v43  ;;  %v357_v43 = vld [vmem:[#allocation8 + $0xa0] sm:$0xff] }
  0x60   :  { %622 = vmatpush3.xpose.msra.mxu1 %v110_v44  ;;  %589 = vmatprep.subr.mxu0 %v93_v45  ;;  %v359_v44 = vld [vmem:[#allocation8 + $0xb0] sm:$0xff]  ;;  %v354_v45 = vld [vmem:[#allocation8 + $0x88] sm:$0xff] }
  0x61   :  { %623 = vmatprep.subr.mxu1 %v125_v46  ;;  %v356_v46 = vld [vmem:[#allocation8 + $0x98] sm:$0xff] }
  0x63   :  { %590 = vmatpush3.xpose.msra.mxu0 %v77_v47  ;;  %v353_v47 = vld [vmem:[#allocation8 + $0x80] sm:$0xff] }
  0x64   :  { %624 = vmatpush3.xpose.msra.mxu1 %v109_v48  ;;  %591 = vmatprep.subr.mxu0 %v92_v49  ;;  %v355_v48 = vld [vmem:[#allocation8 + $0x90] sm:$0xff]  ;;  %v350_v49 = vld [vmem:[#allocation8 + $0x68] sm:$0xff] }
  0x65   :  { %625 = vmatprep.subr.mxu1 %v124_v50  ;;  %v352_v50 = vld [vmem:[#allocation8 + $0x78] sm:$0xff] }
  0x67   :  { %592 = vmatpush3.xpose.msra.mxu0 %v76_v51  ;;  %v349_v51 = vld [vmem:[#allocation8 + $0x60] sm:$0xff] }
  0x68   :  { %626 = vmatpush3.xpose.msra.mxu1 %v108_v52  ;;  %593 = vmatprep.subr.mxu0 %v91_v53  ;;  %v351_v52 = vld [vmem:[#allocation8 + $0x70] sm:$0xff]  ;;  %v346_v53 = vld [vmem:[#allocation8 + $0x48] sm:$0xff] }
  0x69   :  { %627 = vmatprep.subr.mxu1 %v123_v54  ;;  %v348_v54 = vld [vmem:[#allocation8 + $0x58] sm:$0xff] }
  0x6b   :  { %594 = vmatpush3.xpose.msra.mxu0 %v75_v55  ;;  %v345_v55 = vld [vmem:[#allocation8 + $0x40] sm:$0xff] }
  0x6c   :  { %628 = vmatpush3.xpose.msra.mxu1 %v107_v56  ;;  %595 = vmatprep.subr.mxu0 %v90_v57  ;;  %v347_v56 = vld [vmem:[#allocation8 + $0x50] sm:$0xff]  ;;  %v342_v57 = vld [vmem:[#allocation8 + $0x28] sm:$0xff] }
  0x6d   :  { %629 = vmatprep.subr.mxu1 %v122_v58  ;;  %v344_v58 = vld [vmem:[#allocation8 + $0x38] sm:$0xff] }
  0x6f   :  { %596 = vmatpush3.xpose.msra.mxu0 %v74_v59  ;;  %v341_v59 = vld [vmem:[#allocation8 + $0x20] sm:$0xff] }
  0x70   :  { %630 = vmatpush3.xpose.msra.mxu1 %v106_v60  ;;  %597 = vmatprep.subr.mxu0 %v89_v61  ;;  %v343_v60 = vld [vmem:[#allocation8 + $0x30] sm:$0xff]  ;;  %v338_v61 = vld [vmem:[#allocation8 + $0x8] sm:$0xff] }
  0x71   :  { %631 = vmatprep.subr.mxu1 %v121_v62  ;;  %v340_v62 = vld [vmem:[#allocation8 + $0x18] sm:$0xff] }
  0x73   :  { %598 = vmatpush3.xpose.msra.mxu0 %v73_v63  ;;  %v337_v63 = vld [vmem:[#allocation8] sm:$0xff] }
  0x74   :  { %632 = vmatpush3.xpose.msra.mxu1 %v105_v0  ;;  %408 = vmatprep.subr.mxu0 %v398_v1  ;;  %v339_v0 = vld [vmem:[#allocation8 + $0x10] sm:$0xff]  ;;  %v139_v1 = vlaneseq }
  0x75   :  { %478 = vmatprep.subr.mxu1 %v400_v2 }
  0x76   :  { %600 = vmatmul.mubr.f32.vlgmr.msra.gmra.mxu0 %v811_v26  ;;  %v140_v2 = vshrl.u32 %v139_v1, 7 }
  0x77   :  { %634 = vmatmul.mubr.f32.vlgmr.msra.gmra.mxu1 %v811_v26  ;;  %409 = vmatpush1.xpose.msra.mxu0 %v397_v3  ;;  %v376_v26 = vld [vmem:[#allocation8 + $0x138] sm:$0xff] }
  0x78   :  { %479 = vmatpush1.xpose.msra.mxu1 %v399_v4  ;;  %410 = vmatprep.subr.mxu0 %v394_v5  ;;  %v141_v3 = vsub.s32 0, %v140_v2  ;;  %v149_v4 = vsub.s32 2, %v140_v2  ;;  %v137_v5 = vld [vmem:[#allocation7] sm:$0xf] }
  0x79   :  { %480 = vmatprep.subr.mxu1 %v396_v6  ;;  %v145_v6 = vsub.s32 1, %v140_v2 }
  0x7b   :  { %411 = vmatpush1.xpose.msra.mxu0 %v393_v7  ;;  %v153_v7 = vsub.s32 3, %v140_v2 }
  0x7c   :  { %481 = vmatpush1.xpose.msra.mxu1 %v395_v8  ;;  %412 = vmatprep.subr.mxu0 %v390_v9  ;;  %v142_v8 = vrot.slane %v137_v5, %v141_v3  ;;  %v150_v9 = vrot.slane %v137_v5, %v149_v4 }
  0x7d   :  { %482 = vmatprep.subr.mxu1 %v392_v10 }
  0x7f   :  { %413 = vmatpush1.xpose.msra.mxu0 %v389_v11 }
  0x80   :  { %483 = vmatpush1.xpose.msra.mxu1 %v391_v12  ;;  %414 = vmatprep.subr.mxu0 %v386_v13  ;;  %v146_v12 = vrot.slane %v137_v5, %v145_v6  ;;  %v154_v13 = vrot.slane %v137_v5, %v153_v7 }
  0x81   :  { %484 = vmatprep.subr.mxu1 %v388_v14 }
  0x83   :  { %415 = vmatpush1.xpose.msra.mxu0 %v385_v15 }
  0x84   :  { %485 = vmatpush1.xpose.msra.mxu1 %v387_v16  ;;  %416 = vmatprep.subr.mxu0 %v382_v17 }
  0x85   :  { %486 = vmatprep.subr.mxu1 %v384_v18 }
  0x87   :  { %417 = vmatpush1.xpose.msra.mxu0 %v381_v19 }
  0x88   :  { %487 = vmatpush1.xpose.msra.mxu1 %v383_v20  ;;  %418 = vmatprep.subr.mxu0 %v378_v21 }
  0x89   :  { %488 = vmatprep.subr.mxu1 %v380_v22 }
  0x8b   :  { %419 = vmatpush1.xpose.msra.mxu0 %v377_v23 }
  0x8c   :  { %489 = vmatpush1.xpose.msra.mxu1 %v379_v24  ;;  %420 = vmatprep.subr.mxu0 %v374_v25 }
  0x8d   :  { %490 = vmatprep.subr.mxu1 %v376_v26 }
  0x8f   :  { %421 = vmatpush1.xpose.msra.mxu0 %v373_v27 }
  0x90   :  { %491 = vmatpush1.xpose.msra.mxu1 %v375_v28  ;;  %422 = vmatprep.subr.mxu0 %v370_v29 }
  0x91   :  { %492 = vmatprep.subr.mxu1 %v372_v30 }
  0x93   :  { %423 = vmatpush1.xpose.msra.mxu0 %v369_v31 }
  0x94   :  { %493 = vmatpush1.xpose.msra.mxu1 %v371_v32  ;;  %424 = vmatprep.subr.mxu0 %v366_v33 }
  0x95   :  { %494 = vmatprep.subr.mxu1 %v368_v34 }
  0x97   :  { %425 = vmatpush1.xpose.msra.mxu0 %v365_v35 }
  0x98   :  { %495 = vmatpush1.xpose.msra.mxu1 %v367_v36  ;;  %426 = vmatprep.subr.mxu0 %v362_v37 }
  0x99   :  { %496 = vmatprep.subr.mxu1 %v364_v38 }
  0x9b   :  { %427 = vmatpush1.xpose.msra.mxu0 %v361_v39 }
  0x9c   :  { %497 = vmatpush1.xpose.msra.mxu1 %v363_v40  ;;  %428 = vmatprep.subr.mxu0 %v358_v41 }
  0x9d   :  { %498 = vmatprep.subr.mxu1 %v360_v42 }
  0x9f   :  { %429 = vmatpush1.xpose.msra.mxu0 %v357_v43 }
  0xa0   :  { %499 = vmatpush1.xpose.msra.mxu1 %v359_v44  ;;  %430 = vmatprep.subr.mxu0 %v354_v45 }
  0xa1   :  { %500 = vmatprep.subr.mxu1 %v356_v46 }
  0xa3   :  { %431 = vmatpush1.xpose.msra.mxu0 %v353_v47 }
  0xa4   :  { %501 = vmatpush1.xpose.msra.mxu1 %v355_v48  ;;  %432 = vmatprep.subr.mxu0 %v350_v49 }
  0xa5   :  { %502 = vmatprep.subr.mxu1 %v352_v50 }
  0xa7   :  { %433 = vmatpush1.xpose.msra.mxu0 %v349_v51 }
  0xa8   :  { %503 = vmatpush1.xpose.msra.mxu1 %v351_v52  ;;  %434 = vmatprep.subr.mxu0 %v346_v53 }
  0xa9   :  { %504 = vmatprep.subr.mxu1 %v348_v54 }
  0xab   :  { %435 = vmatpush1.xpose.msra.mxu0 %v345_v55 }
  0xac   :  { %505 = vmatpush1.xpose.msra.mxu1 %v347_v56  ;;  %436 = vmatprep.subr.mxu0 %v342_v57  ;;  %v566_v56 = vld [vmem:[%s827_s4] ss:$0 sm:$0xff] }
  0xad   :  { %506 = vmatprep.subr.mxu1 %v344_v58 }
  0xaf   :  { %437 = vmatpush1.xpose.msra.mxu0 %v341_v59 }
  0xb0   :  { %507 = vmatpush1.xpose.msra.mxu1 %v343_v60  ;;  %438 = vmatprep.subr.mxu0 %v338_v61 }
  0xb1   :  { %508 = vmatprep.subr.mxu1 %v340_v62 }
  0xb3   :  { %439 = vmatpush1.xpose.msra.mxu0 %v337_v63 }
  0xb4   :  { %509 = vmatpush1.xpose.msra.mxu1 %v339_v0 }
 0x136   :  { %v225_v10 = vpop.f32.mrf.mxu0 }
 0x137   :  { %v296_v11 = vpop.f32.mrf.mxu1  ;;  %v226_v14 = vadd.f32 %v225_v10, %v142_v8 }
 0x138   :  { %v297_v15 = vadd.f32 %v296_v11, %v150_v9  ;;  %v227_v16 = vpop.f32.mrf.mxu0 }
 0x139   :  { %v298_v17 = vpop.f32.mrf.mxu1  ;;  %v305_v18 = vmul.f32 %v226_v14, %v226_v14  ;;  %v228_v20 = vadd.f32 %v227_v16, %v146_v12  ;;  %v301_v48 = vmul.f32 0.5, %v226_v14 }
 0x13a   :  { %v307_v19 = vmul.f32 %v297_v15, %v297_v15  ;;  %v299_v21 = vadd.f32 %v298_v17, %v154_v13  ;;  %v303_v51 = vmul.f32 0.5, %v297_v15 }
 0x13b   :  { %v309_v22 = vmul.f32 %v305_v18, %v226_v14  ;;  %v306_v24 = vmul.f32 %v228_v20, %v228_v20  ;;  %v302_v45 = vmul.f32 0.5, %v228_v20 }
 0x13c   :  { %v311_v23 = vmul.f32 %v307_v19, %v297_v15  ;;  %v308_v25 = vmul.f32 %v299_v21, %v299_v21  ;;  %v304_v49 = vmul.f32 0.5, %v299_v21 }
 0x13d   :  { %v313_v26 = vmul.f32 0.044715, %v309_v22  ;;  %v310_v28 = vmul.f32 %v306_v24, %v228_v20 }
 0x13e   :  { %v315_v27 = vmul.f32 0.044715, %v311_v23  ;;  %v312_v29 = vmul.f32 %v308_v25, %v299_v21 }
 0x13f   :  { %v317_v30 = vadd.f32 %v313_v26, %v226_v14  ;;  %v314_v32 = vmul.f32 0.044715, %v310_v28 }
 0x140   :  { %v319_v31 = vadd.f32 %v315_v27, %v297_v15  ;;  %v316_v33 = vmul.f32 0.044715, %v312_v29 }
 0x141   :  { %v321_v34 = vmul.f32 0.7978846, %v317_v30  ;;  %v318_v36 = vadd.f32 %v314_v32, %v228_v20 }
 0x142   :  { %v323_v35 = vmul.f32 0.7978846, %v319_v31  ;;  %v320_v37 = vadd.f32 %v316_v33, %v299_v21 }
 0x143   :  { %644 = vtanh.f32 %v321_v34  ;;  %v322_v38 = vmul.f32 0.7978846, %v318_v36 }
 0x144   :  { %646 = vtanh.f32 %v323_v35  ;;  %v324_v39 = vmul.f32 0.7978846, %v320_v37 }
 0x145   :  { %648 = vtanh.f32 %v322_v38 }
 0x146   :  { %650 = vtanh.f32 %v324_v39 }
 0x150   :  { %v645_v40 = vpop.eup %644 }
 0x151   :  { %v647_v41 = vpop.eup %646  ;;  %v329_v43 = vadd.f32 1.0, %v645_v40 }
 0x152   :  { %v649_v42 = vpop.eup %648  ;;  %v331_v47 = vadd.f32 1.0, %v647_v41 }
 0x153   :  { %v651_v44 = vpop.eup %650  ;;  %v330_v46 = vadd.f32 1.0, %v649_v42  ;;  %v333_v54 = vmul.f32 %v329_v43, %v301_v48 }
 0x154   :  { %v332_v50 = vadd.f32 1.0, %v651_v44  ;;  %v335_v55 = vmul.f32 %v331_v47, %v303_v51 }
 0x155   :  { %v334_v52 = vmul.f32 %v330_v46, %v302_v45 }
 0x156   :  { %v336_v53 = vmul.f32 %v332_v50, %v304_v49 }
 0x157   :  { %472 = vmatprep.mubr.f32.mxu0 %v334_v52 }
 0x158   :  { %542 = vmatprep.mubr.f32.mxu1 %v336_v53  ;;  %473 = vmatmul.mubr.f32.vlgmr.msra.gmra.mxu0 %v333_v54 }
 0x159   :  { %543 = vmatmul.mubr.f32.vlgmr.msra.gmra.mxu1 %v335_v55 }
 0x218   :  { %v474_v57 = vpop.f32.mrf.mxu0 }
 0x219   :  { %v475_v58 = vadd.f32 %v566_v56, %v474_v57  ;;  %v544_v59 = vpop.f32.mrf.mxu1 }
 0x21a   :  { %v476_v60 = vpop.f32.mrf.mxu0 }
 0x21b   :  { %v545_v61 = vadd.f32 %v544_v59, %v475_v58  ;;  %v546_v62 = vpop.f32.mrf.mxu1 }
 0x21d   :  { %548 = vst [vmem:[#allocation10] sm:$0xff] %v545_v61 }
 0x21e   :  { %743 = shalt.err (!%p740_p10)
}
 0x21f   :  { %558 = dma.vmem_to_hbm [thread:$0]  %s556_s16, 128, %s828_s5, [#allocation4]  }
 0x220   :  { %758 = dma.done.wait [#allocation4], 128  }
 0x221   :  { %759 = vsyncadd [#allocation4], 4294967168 }
 0x222   :  { %562 = vsyncpa [#allocation3], 1 }
 0x223   :  { %563 = vsyncpa [#allocation6], 1 }
 0x224   :  { %564 = vsyncpa [#allocation9], 1 }
 0x225   :  { %565 = vsyncpa [#allocation4], 1 }

</bundles_post_ra>
